<compile_context>
chip_gen: v5e
topology: v5e:2x2
jax: 0.10.0
libtpu: 0.0.40
codegen_flags: <defaults>
</compile_context>

<pallas_src>
import jax
import jax.numpy as jnp
from jax.experimental import pallas as pl
from jax.experimental.pallas import tpu as pltpu

EPS = 1e-3


def _stats_kernel(x_ref, sum_ref, sumsq_ref):
    """Accumulate per-channel sum and sum-of-squares over the N/HW grid axes."""

    @pl.when((pl.program_id(1) == 0) & (pl.program_id(2) == 0))
    def _():
        sum_ref[...] = jnp.zeros_like(sum_ref)
        sumsq_ref[...] = jnp.zeros_like(sumsq_ref)

    x = x_ref[0].astype(jnp.float32)                      # (tc, thw)
    sum_ref[...] += jnp.sum(x, axis=1, keepdims=True)     # (tc, 1)
    sumsq_ref[...] += jnp.sum(x * x, axis=1, keepdims=True)


def _apply_kernel(x_ref, a_ref, b_ref, o_ref):
    """out = a * x + b with per-channel (tc, 1) coefficients."""
    x = x_ref[0].astype(jnp.float32)                      # (tc, thw)
    o_ref[0] = (a_ref[...] * x + b_ref[...]).astype(o_ref.dtype)


def _pick_tile(dim, unit, cap):
    """Largest multiple of `unit` dividing `dim` and <= cap; full dim if not tileable."""
    if dim % unit != 0:
        return dim
    cap = max(unit, (cap // unit) * unit)
    t = min(dim, cap)
    while dim % t != 0:
        t -= unit
    return t


@jax.jit
def adaptive_norm(x, w0, w1, gamma, beta):
    """x: (N, C, H, W). Returns w0 * x + w1 * BatchNorm2d(x), same shape/dtype."""
    N, C, H, W = x.shape
    HW = H * W
    x3 = x.reshape(N, C, HW)                # free view of contiguous NCHW

    tc = _pick_tile(C, 8, 8)                # 8 f32 sublanes per channel tile
    thw = _pick_tile(HW, 128, 32768)        # lane-dense, <= ~1 MiB per block
    grid = (C // tc, N, HW // thw)          # reduction axes (N, HW) last

    # ---- Pass 1: per-channel batch statistics (single sweep: sum + sumsq) ----
    xsum, xsq = pl.pallas_call(
        _stats_kernel,
        out_shape=(
            jax.ShapeDtypeStruct((C, 1), jnp.float32),
            jax.ShapeDtypeStruct((C, 1), jnp.float32),
        ),
        grid=grid,
        in_specs=[pl.BlockSpec((1, tc, thw), lambda ci, ni, hi: (ni, ci, hi))],
        out_specs=(
            pl.BlockSpec((tc, 1), lambda ci, ni, hi: (ci, 0)),
            pl.BlockSpec((tc, 1), lambda ci, ni, hi: (ci, 0)),
        ),
        compiler_params=pltpu.CompilerParams(
            dimension_semantics=("parallel", "arbitrary", "arbitrary"),
            vmem_limit_bytes=32 * 1024 * 1024,
        ),
    )(x3)

    # ---- Tiny per-channel coefficient math (C-sized; done once, not per block) ----
    cnt = jnp.float32(N * HW)
    mean = xsum / cnt                                       # (C, 1), biased stats
    var = xsq / cnt - mean * mean
    inv_std = jax.lax.rsqrt(var + EPS)
    g = gamma.reshape(C, 1).astype(jnp.float32)
    bt = beta.reshape(C, 1).astype(jnp.float32)
    w0f = jnp.asarray(w0, jnp.float32)
    w1f = jnp.asarray(w1, jnp.float32)
    a = w0f + w1f * g * inv_std                             # (C, 1)
    b = w1f * (bt - g * mean * inv_std)                     # (C, 1)

    # ---- Pass 2: fused per-channel affine apply (one FMA / element) ----
    out3 = pl.pallas_call(
        _apply_kernel,
        out_shape=jax.ShapeDtypeStruct((N, C, HW), x.dtype),
        grid=grid,
        in_specs=[
            pl.BlockSpec((1, tc, thw), lambda ci, ni, hi: (ni, ci, hi)),
            pl.BlockSpec((tc, 1), lambda ci, ni, hi: (ci, 0)),
            pl.BlockSpec((tc, 1), lambda ci, ni, hi: (ci, 0)),
        ],
        out_specs=pl.BlockSpec((1, tc, thw), lambda ci, ni, hi: (ni, ci, hi)),
        compiler_params=pltpu.CompilerParams(
            dimension_semantics=("parallel", "parallel", "parallel"),
            vmem_limit_bytes=32 * 1024 * 1024,
        ),
    )(x3, a, b)

    return out3.reshape(N, C, H, W)


def _reference(x, w0, w1, gamma, beta):
    mean = jnp.mean(x, axis=(0, 2, 3), keepdims=True)
    var = jnp.mean((x - mean) ** 2, axis=(0, 2, 3), keepdims=True)
    bn = gamma.reshape(1, -1, 1, 1) * (x - mean) / jnp.sqrt(var + EPS) + beta.reshape(
        1, -1, 1, 1
    )
    return w0 * x + w1 * bn


if __name__ == "__main__":
    key = jax.random.PRNGKey(0)
    kx, kg, kb, kx2, kg2, kb2 = jax.random.split(key, 6)

    # Primary small test (module-consistent NCHW shapes).
    N, C, H, W = 2, 4, 16, 16
    x = jax.random.normal(kx, (N, C, H, W), dtype=jnp.float32)
    w0 = jnp.asarray(1.0, dtype=jnp.float32)   # module init value
    w1 = jnp.asarray(0.5, dtype=jnp.float32)   # nonzero so the BN branch is exercised
    gamma = 1.0 + 0.1 * jax.random.normal(kg, (C,), dtype=jnp.float32)
    beta = 0.1 * jax.random.normal(kb, (C,), dtype=jnp.float32)

    out = jax.block_until_ready(adaptive_norm(x, w0, w1, gamma, beta))
    ref = _reference(x, w0, w1, gamma, beta)
    assert out.shape == x.shape and out.dtype == x.dtype
    assert jnp.max(jnp.abs(out - ref)) < 1e-4, "mismatch vs reference (shape 1)"

    # Second check: C % 8 == 0 -> multiple channel tiles, exercises the gridded path.
    N2, C2, H2, W2 = 2, 16, 16, 16
    x2 = jax.random.normal(kx2, (N2, C2, H2, W2), dtype=jnp.float32)
    gamma2 = 1.0 + 0.1 * jax.random.normal(kg2, (C2,), dtype=jnp.float32)
    beta2 = 0.1 * jax.random.normal(kb2, (C2,), dtype=jnp.float32)
    out2 = jax.block_until_ready(adaptive_norm(x2, w0, w1, gamma2, beta2))
    ref2 = _reference(x2, w0, w1, gamma2, beta2)
    assert jnp.max(jnp.abs(out2 - ref2)) < 1e-4, "mismatch vs reference (shape 2)"

    print("KERNEL_OK")
</pallas_src>

<mosaic_0001>
module attributes {stable_mosaic.version = 11 : i64} {
  func.func @_stats_kernel(%arg0: i32, %arg1: i32, %arg2: i32, %arg3: memref<1x4x256xf32, #tpu.memory_space<vmem>>, %arg4: memref<4x1xf32, #tpu.memory_space<vmem>>, %arg5: memref<4x1xf32, #tpu.memory_space<vmem>>) attributes {dimension_semantics = [#tpu.dimension_semantics<parallel>, #tpu.dimension_semantics<arbitrary>, #tpu.dimension_semantics<arbitrary>], iteration_bounds = array<i64: 1, 2, 1>, scalar_prefetch = 0 : i64, scratch_operands = 0 : i64, tpu.core_type = #tpu.core_type<tc>, window_params = [{transform_indices = @transform_0, window_bounds = array<i64: 1, 4, 256>}, {transform_indices = @transform_1, window_bounds = array<i64: 4, 1>}, {transform_indices = @transform_2, window_bounds = array<i64: 4, 1>}]} {
    %c0_i32 = arith.constant 0 : i32
    %0 = arith.cmpi eq, %arg1, %c0_i32 : i32
    %c0_i32_0 = arith.constant 0 : i32
    %1 = arith.cmpi eq, %arg2, %c0_i32_0 : i32
    %2 = arith.andi %0, %1 : i1
    %3 = arith.extui %2 : i1 to i32
    %c0_i32_1 = arith.constant 0 : i32
    %4 = arith.cmpi ne, %3, %c0_i32_1 : i32
    scf.if %4 {
      %cst_13 = arith.constant 0.000000e+00 : f32
      %18 = vector.broadcast %cst_13 : f32 to vector<4x1xf32>
      %c0_14 = arith.constant 0 : index
      %c0_15 = arith.constant 0 : index
      %19 = vector.load %arg4[%c0_14, %c0_15] : memref<4x1xf32, #tpu.memory_space<vmem>>, vector<4x1xf32>
      tpu.vector_store %arg4[%c0_14, %c0_15], %18 {strides = array<i32>} : memref<4x1xf32, #tpu.memory_space<vmem>>, vector<4x1xf32>,
      %cst_16 = arith.constant 0.000000e+00 : f32
      %20 = vector.broadcast %cst_16 : f32 to vector<4x1xf32>
      %c0_17 = arith.constant 0 : index
      %c0_18 = arith.constant 0 : index
      %21 = vector.load %arg5[%c0_17, %c0_18] : memref<4x1xf32, #tpu.memory_space<vmem>>, vector<4x1xf32>
      tpu.vector_store %arg5[%c0_17, %c0_18], %20 {strides = array<i32>} : memref<4x1xf32, #tpu.memory_space<vmem>>, vector<4x1xf32>,
    } else {
    }
    %c0 = arith.constant 0 : index
    %c0_2 = arith.constant 0 : index
    %c0_3 = arith.constant 0 : index
    %5 = vector.load %arg3[%c0, %c0_2, %c0_3] : memref<1x4x256xf32, #tpu.memory_space<vmem>>, vector<1x4x256xf32>
    %6 = vector.shape_cast %5 : vector<1x4x256xf32> to vector<4x256xf32>
    %c0_4 = arith.constant 0 : index
    %c0_5 = arith.constant 0 : index
    %7 = vector.load %arg4[%c0_4, %c0_5] : memref<4x1xf32, #tpu.memory_space<vmem>>, vector<4x1xf32>
    %cst = arith.constant dense<0.000000e+00> : vector<4xf32>
    %8 = vector.multi_reduction <add>, %6, %cst [1] : vector<4x256xf32> to vector<4xf32>
    %9 = vector.shape_cast %8 : vector<4xf32> to vector<4x1xf32>
    %10 = arith.addf %7, %9 : vector<4x1xf32>
    %c0_6 = arith.constant 0 : index
    %c0_7 = arith.constant 0 : index
    %11 = vector.load %arg4[%c0_6, %c0_7] : memref<4x1xf32, #tpu.memory_space<vmem>>, vector<4x1xf32>
    tpu.vector_store %arg4[%c0_6, %c0_7], %10 {strides = array<i32>} : memref<4x1xf32, #tpu.memory_space<vmem>>, vector<4x1xf32>,
    %c0_8 = arith.constant 0 : index
    %c0_9 = arith.constant 0 : index
    %12 = vector.load %arg5[%c0_8, %c0_9] : memref<4x1xf32, #tpu.memory_space<vmem>>, vector<4x1xf32>
    %13 = arith.mulf %6, %6 : vector<4x256xf32>
    %cst_10 = arith.constant dense<0.000000e+00> : vector<4xf32>
    %14 = vector.multi_reduction <add>, %13, %cst_10 [1] : vector<4x256xf32> to vector<4xf32>
    %15 = vector.shape_cast %14 : vector<4xf32> to vector<4x1xf32>
    %16 = arith.addf %12, %15 : vector<4x1xf32>
    %c0_11 = arith.constant 0 : index
    %c0_12 = arith.constant 0 : index
    %17 = vector.load %arg5[%c0_11, %c0_12] : memref<4x1xf32, #tpu.memory_space<vmem>>, vector<4x1xf32>
    tpu.vector_store %arg5[%c0_11, %c0_12], %16 {strides = array<i32>} : memref<4x1xf32, #tpu.memory_space<vmem>>, vector<4x1xf32>,
    return
  }
  func.func @transform_0(%arg0: i32, %arg1: i32, %arg2: i32) -> (i32, i32, i32) {
    %c0_i32 = arith.constant 0 : i32
    return %arg1, %arg0, %arg2 : i32, i32, i32
  }
  func.func @transform_1(%arg0: i32, %arg1: i32, %arg2: i32) -> (i32, i32) {
    %c0_i32 = arith.constant 0 : i32
    %c0_i32_0 = arith.constant 0 : i32
    return %arg0, %c0_i32 : i32, i32
  }
  func.func @transform_2(%arg0: i32, %arg1: i32, %arg2: i32) -> (i32, i32) {
    %c0_i32 = arith.constant 0 : i32
    %c0_i32_0 = arith.constant 0 : i32
    return %arg0, %c0_i32 : i32, i32
  }
}

module attributes {stable_mosaic.version = 11 : i64} {
  func.func @_apply_kernel(%arg0: i32, %arg1: i32, %arg2: i32, %arg3: memref<1x4x256xf32, #tpu.memory_space<vmem>>, %arg4: memref<4x1xf32, #tpu.memory_space<vmem>>, %arg5: memref<4x1xf32, #tpu.memory_space<vmem>>, %arg6: memref<1x4x256xf32, #tpu.memory_space<vmem>>) attributes {dimension_semantics = [#tpu.dimension_semantics<parallel>, #tpu.dimension_semantics<parallel>, #tpu.dimension_semantics<parallel>], iteration_bounds = array<i64: 1, 2, 1>, scalar_prefetch = 0 : i64, scratch_operands = 0 : i64, tpu.core_type = #tpu.core_type<tc>, window_params = [{transform_indices = @transform_0, window_bounds = array<i64: 1, 4, 256>}, {transform_indices = @transform_1, window_bounds = array<i64: 4, 1>}, {transform_indices = @transform_2, window_bounds = array<i64: 4, 1>}, {transform_indices = @transform_3, window_bounds = array<i64: 1, 4, 256>}]} {
    %c0 = arith.constant 0 : index
    %c0_0 = arith.constant 0 : index
    %c0_1 = arith.constant 0 : index
    %0 = vector.load %arg3[%c0, %c0_0, %c0_1] : memref<1x4x256xf32, #tpu.memory_space<vmem>>, vector<1x4x256xf32>
    %1 = vector.shape_cast %0 : vector<1x4x256xf32> to vector<4x256xf32>
    %c0_2 = arith.constant 0 : index
    %c0_3 = arith.constant 0 : index
    %2 = vector.load %arg4[%c0_2, %c0_3] : memref<4x1xf32, #tpu.memory_space<vmem>>, vector<4x1xf32>
    %3 = vector.broadcast %2 : vector<4x1xf32> to vector<4x256xf32>
    %4 = arith.mulf %3, %1 : vector<4x256xf32>
    %c0_4 = arith.constant 0 : index
    %c0_5 = arith.constant 0 : index
    %5 = vector.load %arg5[%c0_4, %c0_5] : memref<4x1xf32, #tpu.memory_space<vmem>>, vector<4x1xf32>
    %6 = vector.broadcast %5 : vector<4x1xf32> to vector<4x256xf32>
    %7 = arith.addf %4, %6 : vector<4x256xf32>
    %c0_6 = arith.constant 0 : index
    %c0_7 = arith.constant 0 : index
    %c0_8 = arith.constant 0 : index
    %8 = vector.load %arg6[%c0_6, %c0_7, %c0_8] : memref<1x4x256xf32, #tpu.memory_space<vmem>>, vector<1x4x256xf32>
    %9 = vector.shape_cast %8 : vector<1x4x256xf32> to vector<4x256xf32>
    %10 = vector.shape_cast %7 : vector<4x256xf32> to vector<1x4x256xf32>
    tpu.vector_store %arg6[%c0_6, %c0_7, %c0_8], %10 {strides = array<i32>} : memref<1x4x256xf32, #tpu.memory_space<vmem>>, vector<1x4x256xf32>,
    return
  }
  func.func @transform_0(%arg0: i32, %arg1: i32, %arg2: i32) -> (i32, i32, i32) {
    %c0_i32 = arith.constant 0 : i32
    return %arg1, %arg0, %arg2 : i32, i32, i32
  }
  func.func @transform_1(%arg0: i32, %arg1: i32, %arg2: i32) -> (i32, i32) {
    %c0_i32 = arith.constant 0 : i32
    %c0_i32_0 = arith.constant 0 : i32
    return %arg0, %c0_i32 : i32, i32
  }
  func.func @transform_2(%arg0: i32, %arg1: i32, %arg2: i32) -> (i32, i32) {
    %c0_i32 = arith.constant 0 : i32
    %c0_i32_0 = arith.constant 0 : i32
    return %arg0, %c0_i32 : i32, i32
  }
  func.func @transform_3(%arg0: i32, %arg1: i32, %arg2: i32) -> (i32, i32, i32) {
    %c0_i32 = arith.constant 0 : i32
    return %arg1, %arg0, %arg2 : i32, i32, i32
  }
}

</mosaic_0001>

<bundles_post_ra>
// kernel: adaptive_norm.2
= control target key start
LH: loop header
LB: loop body
LE: loop exit
PB: predicated region body
PF: predicated region fallthrough
CT: control target
= control target key end

     0   :  { %s423_s9 = smov 0   ;;  %s425_s10 = smov 0   ;;  %s471_s0 = inlined_call_operand.vmem [shape: f32[2,4,256], index: 0, kind: input, shape index: {}]   ;;  %s472_s1 = inlined_call_operand.vmem [shape: f32[4,1], index: 1, kind: output, shape index: {0}]   ;;  %s473_s2 = inlined_call_operand.vmem [shape: f32[4,1], index: 2, kind: output, shape index: {1}]  }
   0x1   :  { %s427_s11 = smov 0  }
   0x2 LB: > { %s28_s12 = sadd.s32 1, %s401_s10  ;;  %p348_p0 = scmp.ge.s32.totalorder %s405_s11, 1  ;;  %s405_s11 = sphi %s427_s11, %s13_s11   ;;  %s401_s10 = sphi %s425_s10, %s475_s10   ;;  %s397_s9 = sphi %s423_s9, %s474_s9  }
   0x3   : > { %p30_p1 = scmp.ge.s32.totalorder %s28_s12, 2  ;;  %p147_p2 = scmp.lt.s32.totalorder %s405_s11, 3 }
   0x5   : > { %s477_s12 = smov (%p30_p1, %s28_s12), 0  ;;  %p148_p3 = pnand %p348_p0, %p147_p2 }
   0x6   : > { %p181_p4 = scmp.lt.s32.totalorder (!%p148_p3), %s397_s9, 1  ;;  %p202_p5 = scmp.eq.s32.totalorder (!%p148_p3), %s397_s9, 0 }
   0x7   : > { %151 = sbr.rel (%p148_p3) target bundleno = 156 (0x9c), region = 24 }
   0xc   : > { %s479_s9 = smov (!%p181_p4, %s397_s9), 1  ;;  %207 = sbr.rel (!%p202_p5) target bundleno = 17 (0x11), region = 28  ;;  %vm208_vm0 = vcmask (%p202_p5), 3072   ;;  %v407_v0 = vmov (%p202_p5), 0.0  }
   0xd   : > { %s356_s13 = sshll.u32 %s479_s9, 3  ;;  %209 = vst.msk [vmem:[%s472_s1] sm:$0xf] (%p202_p5), %vm208_vm0, %v407_v0 }
   0xe   : > { %s192_s16 = scalar_lea.vmem %s471_s0, %s356_s13  ;;  %210 = vst.msk [vmem:[%s473_s2] sm:$0xf] (%p202_p5), %vm208_vm0, %v407_v0 }
  0x11 PF: > { %v211_v1 = vld [vmem:[%s192_s16] sm:$0xff]  ;;  %vm219_vm1 = vcmask 1043456   ;;  %vm226_vm2 = vcmask 3072  }
  0x12   : > { %214 = vst [vmem:[#allocation1] ss:$2 sm:$0xff] %v211_v1  ;;  %v229_v2 = vmul.f32 %v211_v1, %v211_v1 }
  0x14   : > { %v212_v13 = vld [vmem:[%s472_s1] sm:$0xf] }
  0x15   : > { %v228_v16 = vld [vmem:[%s473_s2] sm:$0xf] }
  0x19   : > { %v215_v3 = vld.sshfl [vmem:[#allocation1] sm:$0xff pattern:$0x75316420]  ;;  %v216_v4 = vld.sshfl [vmem:[#allocation1 + $0x8] sm:$0xff pattern:$0x75316420] }
  0x1a   : > { %v220_v5 = vsel %vm219_vm1, %v215_v3, 0.0  ;;  %v221_v6 = vsel %vm219_vm1, %v216_v4, 0.0  ;;  %231 = vst [vmem:[#allocation1] ss:$2 sm:$0xff] %v229_v2 }
  0x1b   : > { %v222_v7 = vadd.f32 %v221_v6, %v220_v5 }
  0x1d   : > { %223 = vadd.xlane.f32.xlu0 %v222_v7 }
  0x21   : > { %v232_v8 = vld.sshfl [vmem:[#allocation1] sm:$0xff pattern:$0x75316420]  ;;  %v233_v9 = vld.sshfl [vmem:[#allocation1 + $0x8] sm:$0xff pattern:$0x75316420] }
  0x22   : > { %v236_v10 = vsel %vm219_vm1, %v232_v8, 0.0  ;;  %v237_v11 = vsel %vm219_vm1, %v233_v9, 0.0 }
  0x23   : > { %v238_v12 = vadd.f32 %v237_v11, %v236_v10 }
  0x25   : > { %239 = vadd.xlane.f32.xlu0 %v238_v12 }
  0x90   : > { %v224_v14 = vpop.xlane.xlu0 %223 }
  0x91   : > { %v225_v15 = vadd.f32 %v224_v14, %v212_v13 }
  0x93   : > { %227 = vst.msk [vmem:[%s472_s1] sm:$0xf] %vm226_vm2, %v225_v15 }
  0x98   : > { %v240_v17 = vpop.xlane.xlu0 %239 }
  0x99   : > { %v241_v18 = vadd.f32 %v240_v17, %v228_v16 }
  0x9b   : > { %242 = vst.msk [vmem:[%s473_s2] sm:$0xf] %vm226_vm2, %v241_v18 }
  0x9c PF: > { %s13_s11 = sadd.s32 1, %s405_s11   ;;  %s474_s9 = smov %s401_s10 }
  0x9d   : > { %p10_p6 = scmp.ge.s32.totalorder %s13_s11, 4   ;;  %s475_s10 = smov %s477_s12 }
  0x9f   :  { %12 = sbr.rel (!%p10_p6) target bundleno = 2 (0x2), region = 70 }

// kernel: adaptive_norm.3
= control target key start
LH: loop header
LB: loop body
LE: loop exit
PB: predicated region body
PF: predicated region fallthrough
CT: control target
= control target key end

     0   :  { %s533_s12 = smov 0   ;;  %s535_s13 = smov 0   ;;  %s572_s0 = inlined_call_operand.vmem [shape: f32[2,4,256], index: 0, kind: input, shape index: {}]   ;;  %s573_s1 = inlined_call_operand.vmem [shape: f32[4,1], index: 1, kind: input, shape index: {}]   ;;  %s574_s2 = inlined_call_operand.vmem [shape: f32[4,1], index: 2, kind: input, shape index: {}]   ;;  %s575_s3 = inlined_call_operand.vmem [shape: f32[2,4,256], index: 3, kind: output, shape index: {}]  }
   0x1   :  { %s537_s14 = smov 0  }
   0x2 LB: > { %s28_s15 = sadd.s32 1, %s506_s13  ;;  %p453_p0 = scmp.ge.s32.totalorder %s510_s14, 1  ;;  %s510_s14 = sphi %s537_s14, %s13_s14   ;;  %s506_s13 = sphi %s535_s13, %s577_s13   ;;  %s502_s12 = sphi %s533_s12, %s576_s12  }
   0x3   : > { %p30_p1 = scmp.ge.s32.totalorder %s28_s15, 2  ;;  %p191_p2 = scmp.lt.s32.totalorder %s510_s14, 3 }
   0x5   : > { %s579_s15 = smov (%p30_p1, %s28_s15), 0  ;;  %p192_p3 = pnand %p453_p0, %p191_p2 }
   0x6   : > { %p240_p4 = scmp.lt.s32.totalorder (!%p192_p3), %s502_s12, 1 }
   0x7   : > { %195 = sbr.rel (%p192_p3) target bundleno = 143 (0x8f), region = 32 }
   0xc   : > { %v276_v0 = vld [vmem:[%s573_s1] sm:$0xf]  ;;  %v512_v1 = vmov 0   ;;  %s581_s12 = smov (!%p240_p4, %s502_s12), 1  ;;  %vm301_vm0 = vcmask 1043456  }
   0xd   : > { %487 = vset.pattern.permute.xlu0 %v512_v1  ;;  %v290_v2 = vld [vmem:[%s574_s2] sm:$0xf]  ;;  %s460_s20 = sshll.u32 %s581_s12, 3 }
   0xe   : > { %279 = vperm.xlu0 %487, %v276_v0   ;;  %s251_s23 = scalar_lea.vmem %s572_s0, %s460_s20  ;;  %s273_s26 = scalar_lea.vmem %s575_s3, %s460_s20 }
   0xf   : > { %v275_v3 = vld [vmem:[%s251_s23] sm:$0xff] }
  0x10   : > { %283 = vst [vmem:[#allocation1] ss:$2 sm:$0xff] %v275_v3 }
  0x16   : > { %293 = vperm.xlu0 %487, %v290_v2  }
  0x17   : > { %v285_v5 = vld.sshfl [vmem:[#allocation1 + $0x8] sm:$0xff pattern:$0x75316420]  ;;  %v284_v6 = vld.sshfl [vmem:[#allocation1] sm:$0xff pattern:$0x75316420] }
  0x80   : > { %v280_v4 = vpop.permute.xlu0 %279 }
  0x81   : > { %v289_v7 = vmul.f32 %v285_v5, %v280_v4  ;;  %v288_v9 = vmul.f32 %v284_v6, %v280_v4 }
  0x88   : > { %v294_v8 = vpop.permute.xlu0 %293 }
  0x89   : > { %v297_v10 = vadd.f32 %v294_v8, %v289_v7  ;;  %v296_v11 = vadd.f32 %v294_v8, %v288_v9 }
  0x8b   : > { %v300_v12 = vrot.slane %v297_v10, 4 }
  0x8d   : > { %v302_v13 = vsel %vm301_vm0, %v296_v11, %v300_v12 }
  0x8e   : > { %304 = vst [vmem:[%s273_s26] sm:$0xff] %v302_v13 }
  0x8f PF: > { %s13_s14 = sadd.s32 1, %s510_s14   ;;  %s576_s12 = smov %s506_s13 }
  0x90   : > { %p10_p5 = scmp.ge.s32.totalorder %s13_s14, 4   ;;  %s577_s13 = smov %s579_s15 }
  0x92   :  { %12 = sbr.rel (!%p10_p5) target bundleno = 2 (0x2), region = 68 }

</bundles_post_ra>
